<compile_context>
chip_gen: v7x
topology: tpu7x:2x2x1
jax: 0.10.0
libtpu: 0.0.40
codegen_flags: <defaults>
</compile_context>

<pallas_src>
import functools
import math

import jax
import jax.numpy as jnp
from jax import lax
from jax.experimental import pallas as pl
from jax.experimental.pallas import tpu as pltpu


def _round_up(x, m):
    return ((x + m - 1) // m) * m


def _pos_encoding_kernel(table_ref, out_ref, *, row_chunk):
    # table_ref: (tseq, td) slab of the positional table for this (seq, d) tile
    # out_ref:   (tb, tseq, td) output block covering `tb` batch rows
    #
    # Copy chunked over rows: one chunk (<= ~64-128 KiB) is loaded once and
    # stored `tb` times, bounding the vreg live range so the store slot stays
    # free for the actual HBM writeback instead of spill traffic.
    tb, tseq, _ = out_ref.shape
    n_chunks = tseq // row_chunk

    def copy_chunk(c, carry):
        r = pl.multiple_of(c * row_chunk, row_chunk)
        rows = table_ref[pl.ds(r, row_chunk), :]
        for b in range(tb):  # static, small
            out_ref[b, pl.ds(r, row_chunk), :] = rows
        return carry

    lax.fori_loop(0, n_chunks, copy_chunk, 0, unroll=(n_chunks <= 4))


def positional_encoding(x, pos_embedding, *, vmem_budget_bytes=None,
                        tseq_max=1024, force_pallas=False):
    """x: (bs, seq) int ids (values unused); pos_embedding: (max_len, d_model).

    Returns (bs, seq, d_model) == pos_embedding[arange(seq)] broadcast over
    batch, matching PositionalEncoding.forward.
    """
    bs, seq = x.shape
    max_len, d_model = pos_embedding.shape
    assert seq <= max_len, "sequence length exceeds max_len of the table"
    dtype = pos_embedding.dtype
    itemsize = jnp.dtype(dtype).itemsize
    out_bytes = bs * seq * d_model * itemsize

    # Tiny outputs: fixed pallas_call launch + per-step overhead exceeds the
    # copy time; XLA's fused broadcast is strictly faster there.
    if not force_pallas and out_bytes < (128 << 10):
        rows = lax.slice(pos_embedding, (0, 0), (seq, d_model))
        return jnp.broadcast_to(rows[None, :, :], (bs, seq, d_model))

    # ---- Generation-aware VMEM budget (v5e/v6e: 128 MiB, v7x: 64 MiB/TC). ----
    try:
        vmem_cap = int(getattr(pltpu.get_tpu_info(), "vmem_capacity_bytes",
                               64 << 20))
    except Exception:
        vmem_cap = 64 << 20  # conservative fallback (v7x per-core size)
    if vmem_budget_bytes is None:
        vmem_budget_bytes = min(24 << 20, vmem_cap // 4)
    vmem_budget_bytes = int(min(vmem_budget_bytes, vmem_cap // 2))

    # Sublane alignment for the second-to-last block dim: 8/16/32 rows for
    # 4/2/1-byte dtypes.
    align = 8 * max(1, 4 // itemsize)

    def block_bytes(tb_, tseq_, td_):
        # double-buffered (tb, tseq, td) output block + (tseq, td) table block
        return 2 * (tb_ + 1) * tseq_ * td_ * itemsize

    # ---- Choose block dims (tb, tseq, td) that fit the budget. ----
    td, tb = d_model, bs
    if d_model > 128 and d_model % 128 == 0:
        # Keep lane-dense tiles: (a) an `align`-row copy chunk should stay
        # within ~32 vregs, (b) the block must fit the VMEM budget even for
        # huge bs*d_model.
        td_vreg_cap = max(128, ((128 << 10) // (align * itemsize)) // 128 * 128)
        td_budget_cap = max(
            128,
            (vmem_budget_bytes // (2 * (tb + 1) * align * itemsize)) // 128 * 128)
        td = min(d_model, td_vreg_cap, td_budget_cap)
    if block_bytes(tb, align, td) > vmem_budget_bytes and bs > 1:
        # Still too big (huge bs): tile the batch as well.
        tb = max(1, min(bs, vmem_budget_bytes // (2 * align * td * itemsize) - 1))
    if block_bytes(tb, align, td) > vmem_budget_bytes:
        raise ValueError(
            f"PositionalEncoding block (bs={bs}, d_model={d_model}, "
            f"dtype={dtype}) does not fit the VMEM budget of "
            f"{vmem_budget_bytes} bytes")

    # Seq tile: as large as the budget allows, but ~512-1024 rows already sits
    # at the HBM-write roofline, so clamp at tseq_max and keep the rest as
    # pipeline headroom.  Also cap at ~seq/2 so there are >=2 grid steps and
    # both v7x TensorCores get work (costs one extra ~0.35us step elsewhere).
    tseq_cap = max(
        align,
        (vmem_budget_bytes // (2 * (tb + 1) * td * itemsize)) // align * align)
    tseq_max_a = max(align, (tseq_max // align) * align)
    seq_half_a = _round_up(pl.cdiv(seq, 2), align)
    tseq = min(tseq_cap, tseq_max_a, seq_half_a)

    # Row chunk for the in-kernel copy loop: a multiple of `align` that divides
    # tseq and keeps one chunk <= ~64 KiB of vregs.
    desired_chunk = max(align, ((64 << 10) // (td * itemsize)) // align * align)
    row_chunk = math.gcd(tseq, desired_chunk)

    num_s = pl.cdiv(seq, tseq)
    num_d = pl.cdiv(d_model, td)
    num_b = pl.cdiv(bs, tb)

    # Explicit scoped-VMEM limit: live double-buffered blocks + headroom for
    # Mosaic internal scratch, capped below the physical capacity.
    live_bytes = block_bytes(tb, tseq, td)
    vmem_limit = int(min(max(live_bytes + (4 << 20), 16 << 20),
                         vmem_cap - (8 << 20)))

    kernel = functools.partial(_pos_encoding_kernel, row_chunk=row_chunk)

    # Full table fed directly (no wrapper slice); the index_map only touches
    # the first cdiv(seq, tseq) row blocks.  Batch tiles are the innermost grid
    # axis so the table block index is unchanged across them and Pallas skips
    # the re-DMA of the table slab.
    return pl.pallas_call(
        kernel,
        out_shape=jax.ShapeDtypeStruct((bs, seq, d_model), dtype),
        grid_spec=pltpu.PrefetchScalarGridSpec(
            num_scalar_prefetch=0,
            grid=(num_s, num_d, num_b),
            in_specs=[
                pl.BlockSpec((tseq, td), lambda s, d, b: (s, d)),
            ],
            out_specs=pl.BlockSpec((tb, tseq, td), lambda s, d, b: (b, s, d)),
        ),
        compiler_params=pltpu.CompilerParams(
            dimension_semantics=("parallel", "parallel", "parallel"),
            vmem_limit_bytes=vmem_limit,
        ),
    )(pos_embedding)


def positional_encoding_ref(x, pos_embedding):
    bs, seq = x.shape
    pos = jnp.arange(seq, dtype=jnp.int32)
    return jnp.broadcast_to(
        pos_embedding[pos][None, :, :], (bs, seq, pos_embedding.shape[1])
    )


if __name__ == "__main__":
    key = jax.random.PRNGKey(0)
    k_x, k_w = jax.random.split(key)

    d_model, max_len = 128, 200

    # Deterministic xavier_uniform init of nn.Embedding(max_len, d_model).weight
    limit = math.sqrt(6.0 / (max_len + d_model))
    pos_embedding = jax.random.uniform(
        k_w, (max_len, d_model), dtype=jnp.float32, minval=-limit, maxval=limit
    )

    # 1) Small demo shape: force the Pallas path (auto path would short-circuit
    #    to a plain broadcast for such a tiny output).
    bs, seq = 2, 8
    x = jax.random.randint(k_x, (bs, seq), 0, 100, dtype=jnp.int32)
    out = jax.block_until_ready(positional_encoding(x, pos_embedding,
                                                    force_pallas=True))
    ref = positional_encoding_ref(x, pos_embedding)
    assert out.shape == (bs, seq, d_model)
    assert out.dtype == jnp.float32
    assert jnp.allclose(out, ref), "mismatch vs reference (small shape)"

    # 2) Slightly larger shape: exercises the auto Pallas path with >=2 seq
    #    tiles (v7x megacore split) and the chunked copy loop.
    bs2, seq2 = 2, 160
    x2 = jax.random.randint(k_x, (bs2, seq2), 0, 100, dtype=jnp.int32)
    out2 = jax.block_until_ready(positional_encoding(x2, pos_embedding))
    ref2 = positional_encoding_ref(x2, pos_embedding)
    assert out2.shape == (bs2, seq2, d_model)
    assert jnp.allclose(out2, ref2), "mismatch vs reference (tiled shape)"

    print("KERNEL_OK")
</pallas_src>

<mosaic_0001>
module attributes {stable_mosaic.version = 11 : i64} {
  func.func @_pos_encoding_kernel(%arg0: i32, %arg1: i32, %arg2: i32, %arg3: memref<8x128xf32, #tpu.memory_space<vmem>>, %arg4: memref<2x8x128xf32, #tpu.memory_space<vmem>>) attributes {dimension_semantics = [#tpu.dimension_semantics<parallel>, #tpu.dimension_semantics<parallel>, #tpu.dimension_semantics<parallel>], iteration_bounds = array<i64: 1, 1, 1>, scalar_prefetch = 0 : i64, scratch_operands = 0 : i64, tpu.core_type = #tpu.core_type<tc>, window_params = [{transform_indices = @transform_0, window_bounds = array<i64: 8, 128>}, {transform_indices = @transform_1, window_bounds = array<i64: 2, 8, 128>}]} {
    %c0_i32 = arith.constant 0 : i32
    %c8_i32 = arith.constant 8 : i32
    %0 = arith.muli %c0_i32, %c8_i32 : i32
    %1 = tpu.assume_multiple %0, 8 : i32
    %2 = arith.index_cast %1 : i32 to index
    %c0 = arith.constant 0 : index
    %3 = vector.load %arg3[%2, %c0] : memref<8x128xf32, #tpu.memory_space<vmem>>, vector<8x128xf32>
    %c0_0 = arith.constant 0 : index
    %4 = arith.index_cast %1 : i32 to index
    %c0_1 = arith.constant 0 : index
    %5 = vector.load %arg4[%c0_0, %4, %c0_1] : memref<2x8x128xf32, #tpu.memory_space<vmem>>, vector<1x8x128xf32>
    %6 = vector.shape_cast %5 : vector<1x8x128xf32> to vector<8x128xf32>
    %7 = vector.shape_cast %3 : vector<8x128xf32> to vector<1x8x128xf32>
    tpu.vector_store %arg4[%c0_0, %4, %c0_1], %7 {strides = array<i32>} : memref<2x8x128xf32, #tpu.memory_space<vmem>>, vector<1x8x128xf32>,
    %c1 = arith.constant 1 : index
    %8 = arith.index_cast %1 : i32 to index
    %c0_2 = arith.constant 0 : index
    %9 = vector.load %arg4[%c1, %8, %c0_2] : memref<2x8x128xf32, #tpu.memory_space<vmem>>, vector<1x8x128xf32>
    %10 = vector.shape_cast %9 : vector<1x8x128xf32> to vector<8x128xf32>
    %11 = vector.shape_cast %3 : vector<8x128xf32> to vector<1x8x128xf32>
    tpu.vector_store %arg4[%c1, %8, %c0_2], %11 {strides = array<i32>} : memref<2x8x128xf32, #tpu.memory_space<vmem>>, vector<1x8x128xf32>,
    %c1_i32 = arith.constant 1 : i32
    return
  }
  func.func @transform_0(%arg0: i32, %arg1: i32, %arg2: i32) -> (i32, i32) {
    %c0_i32 = arith.constant 0 : i32
    return %arg0, %arg1 : i32, i32
  }
  func.func @transform_1(%arg0: i32, %arg1: i32, %arg2: i32) -> (i32, i32, i32) {
    %c0_i32 = arith.constant 0 : i32
    return %arg2, %arg0, %arg1 : i32, i32, i32
  }
}

</mosaic_0001>

<bundles_post_ra>
// kernel: tpu_custom_call.1
= control target key start
LH: loop header
LB: loop body
LE: loop exit
PB: predicated region body
PF: predicated region fallthrough
CT: control target
= control target key end

     0   :  { %6 = vsyncpa [#allocation3], 0  ;;  %s137_s0 = inlined_call_operand.hbm [shape: f32[200,128], index: 0, kind: input, shape index: {}]   ;;  %s138_s1 = inlined_call_operand.hbm [shape: f32[2,8,128], index: 1, kind: output, shape index: {}]  }
   0x1   :  { %7 = vsyncpa [#allocation4], 0  ;;  %s96_s6 = smov [#allocation2]   ;;  %s48_s10 = scalar_lea.hbm %s137_s0, 128 }
   0x2   :  { %s14_s7 = sshll.u32 %s96_s6, 4  ;;  %p49_p0 = scmp.ne.s32.totalorder %s137_s0, %s48_s10  ;;  %s15_s7 = int_to_ptr.vmem [resolvable:$true] %s14_s7 }
   0x3   :  { %s50_s15 = scalar_lea.hbm %s137_s0, 3200  ;;  %p52_p2 = scmp.lt.u32.totalorder %s48_s10, %s137_s0 }
   0x4   :  { %p51_p1 = scmp.lt.u32.totalorder %s50_s15, %s48_s10 }
   0x6   :  { %p53_p3 = por %p52_p2, %p51_p1 }
   0x8   :  { %p54_p4 = pnand %p53_p3, %p49_p0 }
   0xa   :  { %57 = shalt.err (!%p54_p4)
}
   0xb   :  { %s58_s18 = scalar_lea.vmem %s15_s7, 128  ;;  %p63_p6 = scmp.lt.s32.totalorder %s15_s7, %s15_s7 }
   0xc   :  { %p59_p5 = scmp.ne.s32.totalorder %s15_s7, %s58_s18  ;;  %p64_p7 = scmp.lt.s32.totalorder %s58_s18, %s58_s18 }
   0xe   :  { %p65_p8 = por %p64_p7, %p63_p6 }
  0x10   :  { %p66_p9 = pnand %p65_p8, %p59_p5 }
  0x12   :  { %69 = shalt.err (!%p66_p9)
}
  0x13   :  { %17 = dma.hbm_to_vmem [thread:$0]  %s137_s0, 128, %s15_s7, [#allocation3]  }
  0x14   :  { %92 = dma.done.wait [#allocation3], 128  }
  0x15   :  { %93 = vsyncadd [#allocation3], 4294967168  ;;  %s97_s21 = smov [#allocation5]   ;;  %v21_v0 = vld [vmem:[#allocation2] sm:$0xff] }
  0x16   :  { %s31_s22 = sshll.u32 %s97_s21, 4  ;;  %22 = vst [vmem:[#allocation5] sm:$0xff] %v21_v0  ;;  %25 = vst [vmem:[#allocation5 + $0x8] sm:$0xff] %v21_v0  ;;  %s32_s22 = int_to_ptr.vmem [resolvable:$true] %s31_s22 }
  0x17   :  { %s70_s23 = scalar_lea.vmem %s32_s22, 256  ;;  %p75_p11 = scmp.lt.s32.totalorder %s32_s22, %s32_s22 }
  0x18   :  { %p71_p10 = scmp.ne.s32.totalorder %s32_s22, %s70_s23  ;;  %p76_p12 = scmp.lt.s32.totalorder %s70_s23, %s70_s23 }
  0x1a   :  { %p77_p13 = por %p76_p12, %p75_p11 }
  0x1c   :  { %p78_p0 = pnand %p77_p13, %p71_p10 }
  0x1e   :  { %81 = shalt.err (!%p78_p0)
}
  0x1f   :  { %s82_s26 = scalar_lea.hbm %s138_s1, 256 }
  0x20   :  { %p83_p1 = scmp.ne.s32.totalorder %s138_s1, %s82_s26  ;;  %p86_p2 = scmp.lt.u32.totalorder %s82_s26, %s138_s1 }
  0x22   :  { %p88_p3 = pnand %p86_p2, %p83_p1 }
  0x24   :  { %91 = shalt.err (!%p88_p3)
}
  0x25   :  { %s98_s30 = smov 128   ;;  %s99_s2 = smov 8  }
  0x26   :  { %37 = dma.vmem_to_hbm [thread:$0]  %s32_s22, 256, %s138_s1, [#allocation4], %s98_s30, %s98_s30, %s99_s2  }
  0x27   :  { %94 = dma.done.wait [#allocation4], 256  }
  0x28   :  { %95 = vsyncadd [#allocation4], 4294967040 }
  0x29   :  { %41 = vsyncpa [#allocation3], 1 }
  0x2a   :  { %42 = vsyncpa [#allocation4], 1 }

</bundles_post_ra>
